<compile_context>
chip_gen: v5e
topology: v5e:2x2
jax: 0.10.0
libtpu: 0.0.40
codegen_flags: <defaults>
</compile_context>

<pallas_src>
import jax
import jax.numpy as jnp
from jax.experimental import pallas as pl
from jax.experimental.pallas import tpu as pltpu


def mlp_kernel(x_ref, w1_ref, b1_ref, w2_ref, b2_ref, w3_ref, b3_ref, o_ref):
    # bf16 MXU operands, f32 accumulation; bias add + ReLU on the VPU in f32.
    x = x_ref[...].astype(jnp.bfloat16)
    h1 = jnp.dot(x, w1_ref[...], preferred_element_type=jnp.float32) + b1_ref[...]
    h1 = jnp.maximum(h1, 0.0).astype(jnp.bfloat16)   # bf16 LHS for the next dot
    h2 = jnp.dot(h1, w2_ref[...], preferred_element_type=jnp.float32) + b2_ref[...]
    h2 = jnp.maximum(h2, 0.0).astype(jnp.bfloat16)
    out = jnp.dot(h2, w3_ref[...], preferred_element_type=jnp.float32) + b3_ref[...]
    o_ref[...] = out.astype(o_ref.dtype)              # lane-dense (tile, 128) store


def mlp_forward(x, w1, b1, w2, b2, w3, b3, *, batch_tile=128):
    """y = relu(relu(x @ w1 + b1) @ w2 + b2) @ w3 + b3  (f32 in / f32 out)."""
    B, in_dim = x.shape
    out_dim = w3.shape[1]
    lane = 128  # pad final N to a full lane width -> unmasked stores

    # Pad last layer to a lane-dense 128-wide output; extra columns sliced off below.
    w3p = jnp.zeros((w3.shape[0], lane), w3.dtype).at[:, :out_dim].set(w3)
    b3p = jnp.zeros((1, lane), b3.dtype).at[:, :out_dim].set(b3)

    # bf16 weights for the MXU (also halves weight DMA bytes); biases stay f32.
    w1b = w1.astype(jnp.bfloat16)
    w2b = w2.astype(jnp.bfloat16)
    w3b = w3p.astype(jnp.bfloat16)

    # Pad batch up to a multiple of the batch tile (only if needed).
    n_tiles = pl.cdiv(B, batch_tile)
    Bp = n_tiles * batch_tile
    if Bp != B:
        x = jnp.pad(x, ((0, Bp - B), (0, 0)))

    # Weights/biases: constant block index across the batch grid -> fetched once, resident.
    def resident(shape):
        return pl.BlockSpec(shape, lambda i, _n=len(shape): (0,) * _n)

    out = pl.pallas_call(
        mlp_kernel,
        out_shape=jax.ShapeDtypeStruct((Bp, lane), jnp.float32),
        grid=(n_tiles,),
        in_specs=[
            pl.BlockSpec((batch_tile, in_dim), lambda i: (i, 0)),
            resident(w1b.shape), resident(b1.shape),
            resident(w2b.shape), resident(b2.shape),
            resident(w3b.shape), resident(b3p.shape),
        ],
        out_specs=pl.BlockSpec((batch_tile, lane), lambda i: (i, 0)),
        compiler_params=pltpu.CompilerParams(
            dimension_semantics=("parallel",)),  # shard batch tiles across v7x's 2 TCs
    )(x, w1b, b1, w2b, b2, w3b, b3p)

    return out[:B, :out_dim]


def init_linear(key, fan_in, fan_out):
    # Deterministic PyTorch-style uniform(-1/sqrt(fan_in), 1/sqrt(fan_in)) init.
    kw, kb = jax.random.split(key)
    bound = 1.0 / jnp.sqrt(jnp.float32(fan_in))
    # Stored as (in, out) so the kernel does x @ W (== x @ torch_weight.T).
    w = jax.random.uniform(kw, (fan_in, fan_out), jnp.float32, -bound, bound)
    b = jax.random.uniform(kb, (1, fan_out), jnp.float32, -bound, bound)
    return w, b


def ref_mlp(x, w1, b1, w2, b2, w3, b3, cast_dtype=None):
    """Plain-JAX reference. cast_dtype=bf16 mirrors the kernel's MXU operand casts."""
    c = (lambda a: a.astype(cast_dtype)) if cast_dtype is not None else (lambda a: a)
    h1 = jnp.maximum(jnp.dot(c(x), c(w1), preferred_element_type=jnp.float32) + b1, 0.0)
    h2 = jnp.maximum(jnp.dot(c(h1), c(w2), preferred_element_type=jnp.float32) + b2, 0.0)
    return jnp.dot(c(h2), c(w3), preferred_element_type=jnp.float32) + b3


if __name__ == "__main__":
    input_shape, output_shape = 64, 16
    batch = 256  # two 128-row batch tiles -> exercises the parallel batch grid

    key = jax.random.PRNGKey(0)
    kx, k1, k2, k3 = jax.random.split(key, 4)

    x = jax.random.normal(kx, (batch, input_shape), jnp.float32)
    w1, b1 = init_linear(k1, input_shape, 128)
    w2, b2 = init_linear(k2, 128, 32)
    w3, b3 = init_linear(k3, 32, output_shape)

    out = mlp_forward(x, w1, b1, w2, b2, w3, b3)
    jax.block_until_ready(out)
    assert out.shape == (batch, output_shape)

    # Reference that mirrors the kernel's bf16-operand / f32-accumulate math: tight tolerance.
    ref_bf16 = ref_mlp(x, w1, b1, w2, b2, w3, b3, cast_dtype=jnp.bfloat16)
    assert jnp.allclose(out, ref_bf16, atol=2e-3, rtol=2e-3)

    # Sanity check against the pure-f32 reference: loose tolerance (bf16 operands).
    ref_f32 = ref_mlp(x, w1, b1, w2, b2, w3, b3)
    assert jnp.allclose(out, ref_f32, atol=5e-2, rtol=5e-2)

    print("KERNEL_OK")
</pallas_src>

<mosaic_0001>
module attributes {stable_mosaic.version = 11 : i64} {
  func.func @mlp_kernel(%arg0: i32, %arg1: memref<128x64xf32, #tpu.memory_space<vmem>>, %arg2: memref<64x128xbf16, #tpu.memory_space<vmem>>, %arg3: memref<1x128xf32, #tpu.memory_space<vmem>>, %arg4: memref<128x32xbf16, #tpu.memory_space<vmem>>, %arg5: memref<1x32xf32, #tpu.memory_space<vmem>>, %arg6: memref<32x128xbf16, #tpu.memory_space<vmem>>, %arg7: memref<1x128xf32, #tpu.memory_space<vmem>>, %arg8: memref<128x128xf32, #tpu.memory_space<vmem>>) attributes {dimension_semantics = [#tpu.dimension_semantics<parallel>], iteration_bounds = array<i64: 2>, scalar_prefetch = 0 : i64, scratch_operands = 0 : i64, tpu.core_type = #tpu.core_type<tc>, window_params = [{transform_indices = @transform_0, window_bounds = array<i64: 128, 64>}, {pipeline_mode = #tpu.pipeline_mode<synchronous>, transform_indices = @transform_1, window_bounds = array<i64: 64, 128>}, {pipeline_mode = #tpu.pipeline_mode<synchronous>, transform_indices = @transform_2, window_bounds = array<i64: 1, 128>}, {pipeline_mode = #tpu.pipeline_mode<synchronous>, transform_indices = @transform_3, window_bounds = array<i64: 128, 32>}, {pipeline_mode = #tpu.pipeline_mode<synchronous>, transform_indices = @transform_4, window_bounds = array<i64: 1, 32>}, {pipeline_mode = #tpu.pipeline_mode<synchronous>, transform_indices = @transform_5, window_bounds = array<i64: 32, 128>}, {pipeline_mode = #tpu.pipeline_mode<synchronous>, transform_indices = @transform_6, window_bounds = array<i64: 1, 128>}, {transform_indices = @transform_7, window_bounds = array<i64: 128, 128>}]} {
    %c0 = arith.constant 0 : index
    %c0_0 = arith.constant 0 : index
    %0 = vector.load %arg1[%c0, %c0_0] : memref<128x64xf32, #tpu.memory_space<vmem>>, vector<128x64xf32>
    %1 = arith.truncf %0 : vector<128x64xf32> to vector<128x64xbf16>
    %c0_1 = arith.constant 0 : index
    %c0_2 = arith.constant 0 : index
    %2 = vector.load %arg2[%c0_1, %c0_2] : memref<64x128xbf16, #tpu.memory_space<vmem>>, vector<64x128xbf16>
    %cst = arith.constant dense<0.000000e+00> : vector<128x128xf32>
    %3 = tpu.matmul %1, %2, %cst {dimension_numbers = #tpu.dot_dimension_numbers<[1], [0], [0], [1], [0, 0, 1, 1], [], []>} : vector<128x64xbf16>, vector<64x128xbf16>, vector<128x128xf32> -> vector<128x128xf32>
    %c0_3 = arith.constant 0 : index
    %c0_4 = arith.constant 0 : index
    %4 = vector.load %arg3[%c0_3, %c0_4] : memref<1x128xf32, #tpu.memory_space<vmem>>, vector<1x128xf32>
    %5 = vector.broadcast %4 : vector<1x128xf32> to vector<128x128xf32>
    %6 = arith.addf %3, %5 : vector<128x128xf32>
    %cst_5 = arith.constant 0.000000e+00 : f32
    %7 = vector.broadcast %cst_5 : f32 to vector<128x128xf32>
    %8 = arith.maximumf %6, %7 : vector<128x128xf32>
    %9 = arith.truncf %8 : vector<128x128xf32> to vector<128x128xbf16>
    %c0_6 = arith.constant 0 : index
    %c0_7 = arith.constant 0 : index
    %10 = vector.load %arg4[%c0_6, %c0_7] : memref<128x32xbf16, #tpu.memory_space<vmem>>, vector<128x32xbf16>
    %cst_8 = arith.constant dense<0.000000e+00> : vector<128x32xf32>
    %11 = tpu.matmul %9, %10, %cst_8 {dimension_numbers = #tpu.dot_dimension_numbers<[1], [0], [0], [1], [0, 0, 1, 1], [], []>} : vector<128x128xbf16>, vector<128x32xbf16>, vector<128x32xf32> -> vector<128x32xf32>
    %c0_9 = arith.constant 0 : index
    %c0_10 = arith.constant 0 : index
    %12 = vector.load %arg5[%c0_9, %c0_10] : memref<1x32xf32, #tpu.memory_space<vmem>>, vector<1x32xf32>
    %13 = vector.broadcast %12 : vector<1x32xf32> to vector<128x32xf32>
    %14 = arith.addf %11, %13 : vector<128x32xf32>
    %cst_11 = arith.constant 0.000000e+00 : f32
    %15 = vector.broadcast %cst_11 : f32 to vector<128x32xf32>
    %16 = arith.maximumf %14, %15 : vector<128x32xf32>
    %17 = arith.truncf %16 : vector<128x32xf32> to vector<128x32xbf16>
    %c0_12 = arith.constant 0 : index
    %c0_13 = arith.constant 0 : index
    %18 = vector.load %arg6[%c0_12, %c0_13] : memref<32x128xbf16, #tpu.memory_space<vmem>>, vector<32x128xbf16>
    %cst_14 = arith.constant dense<0.000000e+00> : vector<128x128xf32>
    %19 = tpu.matmul %17, %18, %cst_14 {dimension_numbers = #tpu.dot_dimension_numbers<[1], [0], [0], [1], [0, 0, 1, 1], [], []>} : vector<128x32xbf16>, vector<32x128xbf16>, vector<128x128xf32> -> vector<128x128xf32>
    %c0_15 = arith.constant 0 : index
    %c0_16 = arith.constant 0 : index
    %20 = vector.load %arg7[%c0_15, %c0_16] : memref<1x128xf32, #tpu.memory_space<vmem>>, vector<1x128xf32>
    %21 = vector.broadcast %20 : vector<1x128xf32> to vector<128x128xf32>
    %22 = arith.addf %19, %21 : vector<128x128xf32>
    %c0_17 = arith.constant 0 : index
    %c0_18 = arith.constant 0 : index
    %23 = vector.load %arg8[%c0_17, %c0_18] : memref<128x128xf32, #tpu.memory_space<vmem>>, vector<128x128xf32>
    tpu.vector_store %arg8[%c0_17, %c0_18], %22 {strides = array<i32>} : memref<128x128xf32, #tpu.memory_space<vmem>>, vector<128x128xf32>,
    return
  }
  func.func @transform_0(%arg0: i32) -> (i32, i32) {
    %c0_i32 = arith.constant 0 : i32
    %c0_i32_0 = arith.constant 0 : i32
    return %arg0, %c0_i32 : i32, i32
  }
  func.func @transform_1(%arg0: i32) -> (i32, i32) {
    %c0_i32 = arith.constant 0 : i32
    %c0_i32_0 = arith.constant 0 : i32
    %c0_i32_1 = arith.constant 0 : i32
    return %c0_i32, %c0_i32_0 : i32, i32
  }
  func.func @transform_2(%arg0: i32) -> (i32, i32) {
    %c0_i32 = arith.constant 0 : i32
    %c0_i32_0 = arith.constant 0 : i32
    %c0_i32_1 = arith.constant 0 : i32
    return %c0_i32, %c0_i32_0 : i32, i32
  }
  func.func @transform_3(%arg0: i32) -> (i32, i32) {
    %c0_i32 = arith.constant 0 : i32
    %c0_i32_0 = arith.constant 0 : i32
    %c0_i32_1 = arith.constant 0 : i32
    return %c0_i32, %c0_i32_0 : i32, i32
  }
  func.func @transform_4(%arg0: i32) -> (i32, i32) {
    %c0_i32 = arith.constant 0 : i32
    %c0_i32_0 = arith.constant 0 : i32
    %c0_i32_1 = arith.constant 0 : i32
    return %c0_i32, %c0_i32_0 : i32, i32
  }
  func.func @transform_5(%arg0: i32) -> (i32, i32) {
    %c0_i32 = arith.constant 0 : i32
    %c0_i32_0 = arith.constant 0 : i32
    %c0_i32_1 = arith.constant 0 : i32
    return %c0_i32, %c0_i32_0 : i32, i32
  }
  func.func @transform_6(%arg0: i32) -> (i32, i32) {
    %c0_i32 = arith.constant 0 : i32
    %c0_i32_0 = arith.constant 0 : i32
    %c0_i32_1 = arith.constant 0 : i32
    return %c0_i32, %c0_i32_0 : i32, i32
  }
  func.func @transform_7(%arg0: i32) -> (i32, i32) {
    %c0_i32 = arith.constant 0 : i32
    %c0_i32_0 = arith.constant 0 : i32
    return %arg0, %c0_i32 : i32, i32
  }
}

</mosaic_0001>

<bundles_post_ra>
// kernel: tpu_custom_call.1
= control target key start
LH: loop header
LB: loop body
LE: loop exit
PB: predicated region body
PF: predicated region fallthrough
CT: control target
= control target key end

     0   :  { %12 = vsyncpa [#allocation3], 0  ;;  %s1235_s0 = inlined_call_operand.vmem [shape: f32[256,64], index: 0, kind: input, shape index: {}]   ;;  %s1236_s1 = inlined_call_operand.vmem [shape: bf16[64,128], index: 1, kind: input, shape index: {}]   ;;  %s1237_s2 = inlined_call_operand.vmem [shape: f32[1,128], index: 2, kind: input, shape index: {}]   ;;  %s1238_s3 = inlined_call_operand.vmem [shape: bf16[128,32], index: 3, kind: input, shape index: {}]   ;;  %s1239_s4 = inlined_call_operand.vmem [shape: f32[1,32], index: 4, kind: input, shape index: {}]   ;;  %s1240_s5 = inlined_call_operand.vmem [shape: bf16[32,128], index: 5, kind: input, shape index: {}]   ;;  %s1241_s6 = inlined_call_operand.vmem [shape: f32[1,128], index: 6, kind: input, shape index: {}]   ;;  %s1242_s7 = inlined_call_operand.hbm [shape: f32[256,128], index: 7, kind: output, shape index: {}]  }
   0x1   :  { %14 = vsyncpa [#allocation3 + $0x1], 0  ;;  %s1025_s24 = smov 0   ;;  %s1027_s25 = smov 0  }
   0x2   :  { %s1029_s26 = smov 0   ;;  %s1031_s27 = smov 0  }
   0x3 LB: > { %s1046_s28 = sadd.s32 4294967295, %s981_s27   ;;  %s768_s29 = sadd.s32 4294967294, %s981_s27   ;;  %s981_s27 = sphi %s1031_s27, %s1248_s27   ;;  %s977_s26 = sphi %s1029_s26, %s1247_s26   ;;  %s973_s25 = sphi %s1027_s25, %s1246_s25   ;;  %s969_s24 = sphi %s1025_s24, %s1245_s24  }
   0x4   : > { %s1050_s30 = sadd.s32 1, %s981_s27   ;;  %s179_s8 = sadd.s32 1, %s977_s26 }
   0x5   : > { %s176_s9 = ssub.s32 %s981_s27, %s1050_s30  ;;  %p189_p0 = scmp.ne.s32.totalorder %s977_s26, %s973_s25 }
   0x6   : > { %p177_p1 = scmp.eq.s32.totalorder %s176_s9, 0  ;;  %p190_p2 = scmp.eq.s32.totalorder %s1046_s28, 1 }
   0x7   : > { %p195_p3 = scmp.ne.s32.totalorder %s973_s25, %s969_s24  ;;  %p196_p4 = scmp.eq.s32.totalorder %s768_s29, 1 }
   0x8   : > { %s1061_s10 = scalar_select %p177_p1, %s977_s26, %s179_s8  }
   0x9   : > { %p1063_p5 = por %p190_p2, %p189_p0  ;;  %p1067_p6 = por %p196_p4, %p195_p3 }
   0xa   : > { %p771_p7 = scmp.ge.s32.totalorder %s981_s27, 1  ;;  %p241_p8 = scmp.lt.s32.totalorder %s981_s27, 3 }
   0xc   : > { %p242_p9 = pnand %p771_p7, %p241_p8 }
   0xd   : > { %s773_s15 = sshll.u32 (!%p242_p9), %s1046_s28, 4  ;;  %s270_s22 = sand.u32 (!%p242_p9), 1, %s973_s25  }
   0xe   : > { %245 = sbr.rel (%p242_p9) target bundleno = 579 (0x243), region = 48  ;;  %p274_p10 = scmp.lt.s32.totalorder (!%p242_p9), %s773_s15, 31 }
   0xf   : > { %s772_s29 = sshll.u32 (!%p242_p9), %s270_s22, 7  ;;  %s866_s14 = sshll.u32 (!%p242_p9), %s1046_s28, 7 }
  0x10   : > { %s1183_s13 = scalar_lea.vmem (!%p242_p9), [#allocation2], %s772_s29  ;;  %s691_s19 = scalar_lea.sflag (!%p242_p9), [#allocation3], %s270_s22 }
  0x11   : > { %s703_s17 = sshll.u32 (!%p242_p9), %s1183_s13, 4  ;;  %s939_s8 = scalar_lea.hbm (!%p242_p9), %s1242_s7, 256  ;;  %s704_s17 = int_to_ptr.vmem [resolvable:$true] %s703_s17 }
  0x13   : > { %v855_v0 = vld [vmem:[%s1236_s1 + $0x18] sm:$0xff]  ;;  %v854_v1 = vld [vmem:[%s1236_s1 + $0x10] sm:$0xff]  ;;  %s1250_s15 = smov (!%p274_p10, %s773_s15), 31  ;;  %v853_v2 = vld [vmem:[%s1236_s1 + $0x8] sm:$0xff]  ;;  %vm341_vm0 = vcmask 523264   ;;  %vm600_vm1 = vcmask 261120  }
  0x14   : > { %370 = vmatpush.bf16.msra.mxu0 %v855_v0  ;;  %s774_s18 = sshll.u32 %s1250_s15, 3  ;;  %v852_v3 = vld [vmem:[%s1236_s1] sm:$0xff]  ;;  %v863_v19 = vld [vmem:[%s1238_s3 + $0x38] sm:$0xff]  ;;  %v862_v23 = vld [vmem:[%s1238_s3 + $0x30] sm:$0xff] }
  0x15   : > { %s1086_s23 = scalar_lea.vmem %s1235_s0, %s774_s18  ;;  %507 = vmatpush.bf16.msra.mxu1 %v863_v19  ;;  %867 = vmatpush.bf16.msra.mxu3 %v863_v19  ;;  %v861_v24 = vld [vmem:[%s1238_s3 + $0x28] sm:$0xff]  ;;  %v860_v25 = vld [vmem:[%s1238_s3 + $0x20] sm:$0xff]  ;;  %v859_v28 = vld [vmem:[%s1238_s3 + $0x18] sm:$0xff] }
  0x16   : > { %v281_v4 = vld [vmem:[%s1086_s23] sm:$0xff]  ;;  %v282_v5 = vld [vmem:[%s1086_s23 + $0x8] sm:$0xff]  ;;  %v283_v7 = vld [vmem:[%s1086_s23 + $0x10] sm:$0xff] }
  0x17   : > { %v297_v6 = vpack.c.bf16 %v282_v5, %v281_v4  ;;  %v284_v8 = vld [vmem:[%s1086_s23 + $0x18] sm:$0xff]  ;;  %v285_v10 = vld [vmem:[%s1086_s23 + $0x20] sm:$0xff]  ;;  %v286_v11 = vld [vmem:[%s1086_s23 + $0x28] sm:$0xff] }
  0x18   : > { %371 = vmatpush.bf16.msra.mxu0 %v854_v1  ;;  %v298_v9 = vpack.c.bf16 %v284_v8, %v283_v7  ;;  %v299_v12 = vpack.c.bf16 %v286_v11, %v285_v10  ;;  %v287_v13 = vld [vmem:[%s1086_s23 + $0x30] sm:$0xff]  ;;  %v288_v14 = vld [vmem:[%s1086_s23 + $0x38] sm:$0xff]  ;;  %v289_v16 = vld [vmem:[%s1086_s23 + $0x40] sm:$0xff] }
  0x19   : > { %v300_v15 = vpack.c.bf16 %v288_v14, %v287_v13  ;;  %v290_v17 = vld [vmem:[%s1086_s23 + $0x48] sm:$0xff]  ;;  %v291_v20 = vld [vmem:[%s1086_s23 + $0x50] sm:$0xff]  ;;  %v292_v21 = vld [vmem:[%s1086_s23 + $0x58] sm:$0xff]  ;;  %508 = vmatpush.bf16.msra.mxu1 %v862_v23  ;;  %868 = vmatpush.bf16.msra.mxu3 %v862_v23 }
  0x1a   : > { %v301_v18 = vpack.c.bf16 %v290_v17, %v289_v16  ;;  %v302_v22 = vpack.c.bf16 %v292_v21, %v291_v20  ;;  %v293_v26 = vld [vmem:[%s1086_s23 + $0x60] sm:$0xff]  ;;  %v294_v27 = vld [vmem:[%s1086_s23 + $0x68] sm:$0xff]  ;;  %v858_v30 = vld [vmem:[%s1238_s3 + $0x10] sm:$0xff] }
  0x1b   : > { %v303_v29 = vpack.c.bf16 %v294_v27, %v293_v26  ;;  %v857_v31 = vld [vmem:[%s1238_s3 + $0x8] sm:$0xff]  ;;  %v856_v32 = vld [vmem:[%s1238_s3] sm:$0xff]  ;;  %v295_v33 = vld [vmem:[%s1086_s23 + $0x70] sm:$0xff] }
  0x1c   : > { %372 = vmatpush.bf16.msra.mxu0 %v853_v2  ;;  %v296_v34 = vld [vmem:[%s1086_s23 + $0x78] sm:$0xff]  ;;  %v1142_v37 = vld [vmem:[%s1237_s2] ss:$0 sm:$0xff]  ;;  %v865_v23 = vld [vmem:[%s1240_s5 + $0x8] sm:$0xff]  ;;  %s702_s23 = scalar_lea.hbm %s1242_s7, %s866_s14 }
  0x1d   : > { %509 = vmatpush.bf16.msra.mxu1 %v861_v24  ;;  %869 = vmatpush.bf16.msra.mxu3 %v861_v24  ;;  %v304_v35 = vpack.c.bf16 %v296_v34, %v295_v33  ;;  %v864_v24 = vld [vmem:[%s1240_s5] sm:$0xff]  ;;  %s705_s18 = sshll.u32 %s702_s23, 4  ;;  %s706_s18 = int_to_ptr.hbm [resolvable:$true] %s705_s18 }
  0x1e   : > { %631 = vmatpush.bf16.msra.mxu2 %v865_v23  ;;  %s933_s20 = sshra.s32 %s706_s18, 4  ;;  %s934_s20 = int_to_ptr.hbm [resolvable:$true] %s933_s20 }
  0x1f   : > { %s935_s28 = scalar_lea.hbm %s934_s20, 128  ;;  %p940_p0 = scmp.lt.s32.totalorder %s934_s20, %s1242_s7 }
  0x20   : > { %373 = vmatpush.bf16.msra.mxu0 %v852_v3  ;;  %p936_p11 = scmp.ne.s32.totalorder %s934_s20, %s935_s28  ;;  %p941_p1 = scmp.lt.s32.totalorder %s939_s8, %s935_s28 }
  0x21   : > { %510 = vmatpush.bf16.msra.mxu1 %v860_v25  ;;  %870 = vmatpush.bf16.msra.mxu3 %v860_v25 }
  0x22   : > { %632 = vmatpush.bf16.msra.mxu2 %v864_v24  ;;  %v918_v24 = vld [vmem:[%s1241_s6] ss:$0 sm:$0xff]  ;;  %p937_p12 = pnand %p936_p11, %p1063_p5  ;;  %p942_p2 = por %p941_p1, %p940_p0 }
  0x23   : > { %791 = vmatmul.msk.bf16.vlgmr.msra.gmra.mxu0 %vm341_vm0, %v297_v6 }
  0x24   : > { %p938_p13 = pneg %p937_p12 }
  0x25   : > { %511 = vmatpush.bf16.msra.mxu1 %v859_v28  ;;  %871 = vmatpush.bf16.msra.mxu3 %v859_v28 }
  0x26   : > { %p943_p3 = pnand %p942_p2, %p938_p13 }
  0x29   : > { %512 = vmatpush.bf16.msra.mxu1 %v858_v30  ;;  %872 = vmatpush.bf16.msra.mxu3 %v858_v30 }
  0x2d   : > { %513 = vmatpush.bf16.msra.mxu1 %v857_v31  ;;  %873 = vmatpush.bf16.msra.mxu3 %v857_v31 }
  0x31   : > { %514 = vmatpush.bf16.msra.mxu1 %v856_v32  ;;  %874 = vmatpush.bf16.msra.mxu3 %v856_v32  ;;  %v917_v32 = vld [vmem:[%s1239_s4] ss:$0 sm:$0xff] }
  0x33   : > { %792 = vmatmul.msk.bf16.gmra.mxu0 %vm341_vm0, %v298_v9 }
  0x43   : > { %793 = vmatmul.msk.bf16.gmra.mxu0 %vm341_vm0, %v299_v12 }
  0x53   : > { %794 = vmatmul.msk.bf16.gmra.mxu0 %vm341_vm0, %v300_v15 }
  0x63   : > { %795 = vmatmul.msk.bf16.gmra.mxu0 %vm341_vm0, %v301_v18 }
  0x73   : > { %796 = vmatmul.msk.bf16.gmra.mxu0 %vm341_vm0, %v302_v22 }
  0x83   : > { %797 = vmatmul.msk.bf16.gmra.mxu0 %vm341_vm0, %v303_v29 }
  0x93   : > { %798 = vmatmul.msk.bf16.gmra.mxu0 %vm341_vm0, %v304_v35 }
  0xa0   : > { %v375_v36 = vpop.f32.mrf.mxu0 }
  0xa1   : > { %v376_v38 = vadd.f32 %v1142_v37, %v375_v36 }
  0xa3   : > { %v415_v41 = vmax.f32 %v376_v38, 0.0 }
  0xa8   : > { %v377_v39 = vpop.f32.mrf.mxu0 }
  0xa9   : > { %v378_v40 = vadd.f32 %v1142_v37, %v377_v39 }
  0xab   : > { %v416_v42 = vmax.f32 %v378_v40, 0.0 }
  0xad   : > { %v431_v43 = vpack.c.bf16 %v416_v42, %v415_v41 }
  0xaf   : > { %515 = vmatmul.bf16.vlgmr.msra.gmra.mxu1 %v431_v43 }
  0xb0   : > { %v380_v44 = vpop.f32.mrf.mxu0 }
  0xb1   : > { %v381_v45 = vadd.f32 %v1142_v37, %v380_v44 }
  0xb3   : > { %v417_v48 = vmax.f32 %v381_v45, 0.0 }
  0xb8   : > { %v382_v46 = vpop.f32.mrf.mxu0 }
  0xb9   : > { %v383_v47 = vadd.f32 %v1142_v37, %v382_v46 }
  0xbb   : > { %v418_v49 = vmax.f32 %v383_v47, 0.0 }
  0xbd   : > { %v432_v50 = vpack.c.bf16 %v418_v49, %v417_v48 }
  0xbf   : > { %520 = vmatmul.bf16.gmra.mxu1 %v432_v50 }
  0xc0   : > { %v385_v51 = vpop.f32.mrf.mxu0 }
  0xc1   : > { %v386_v52 = vadd.f32 %v1142_v37, %v385_v51 }
  0xc3   : > { %v419_v55 = vmax.f32 %v386_v52, 0.0 }
  0xc8   : > { %v387_v53 = vpop.f32.mrf.mxu0 }
  0xc9   : > { %v388_v54 = vadd.f32 %v1142_v37, %v387_v53 }
  0xcb   : > { %v420_v56 = vmax.f32 %v388_v54, 0.0 }
  0xcd   : > { %v433_v57 = vpack.c.bf16 %v420_v56, %v419_v55 }
  0xcf   : > { %525 = vmatmul.bf16.gmra.mxu1 %v433_v57 }
  0xd0   : > { %v390_v58 = vpop.f32.mrf.mxu0 }
  0xd1   : > { %v391_v59 = vadd.f32 %v1142_v37, %v390_v58 }
  0xd3   : > { %v421_v62 = vmax.f32 %v391_v59, 0.0 }
  0xd8   : > { %v392_v60 = vpop.f32.mrf.mxu0 }
  0xd9   : > { %v393_v61 = vadd.f32 %v1142_v37, %v392_v60 }
  0xdb   : > { %v422_v63 = vmax.f32 %v393_v61, 0.0 }
  0xdd   : > { %v434_v0 = vpack.c.bf16 %v422_v63, %v421_v62 }
  0xdf   : > { %530 = vmatmul.bf16.gmra.mxu1 %v434_v0 }
  0xe0   : > { %v395_v1 = vpop.f32.mrf.mxu0 }
  0xe1   : > { %v396_v2 = vadd.f32 %v1142_v37, %v395_v1 }
  0xe3   : > { %v423_v5 = vmax.f32 %v396_v2, 0.0 }
  0xe8   : > { %v397_v3 = vpop.f32.mrf.mxu0 }
  0xe9   : > { %v398_v4 = vadd.f32 %v1142_v37, %v397_v3 }
  0xeb   : > { %v424_v6 = vmax.f32 %v398_v4, 0.0 }
  0xed   : > { %v435_v7 = vpack.c.bf16 %v424_v6, %v423_v5 }
  0xef   : > { %535 = vmatmul.bf16.gmra.mxu1 %v435_v7 }
  0xf0   : > { %v400_v8 = vpop.f32.mrf.mxu0 }
  0xf1   : > { %v401_v9 = vadd.f32 %v1142_v37, %v400_v8 }
  0xf3   : > { %v425_v12 = vmax.f32 %v401_v9, 0.0 }
  0xf8   : > { %v402_v10 = vpop.f32.mrf.mxu0 }
  0xf9   : > { %v403_v11 = vadd.f32 %v1142_v37, %v402_v10 }
  0xfb   : > { %v426_v13 = vmax.f32 %v403_v11, 0.0 }
  0xfd   : > { %v436_v14 = vpack.c.bf16 %v426_v13, %v425_v12 }
  0xff   : > { %540 = vmatmul.bf16.gmra.mxu1 %v436_v14 }
 0x100   : > { %v405_v15 = vpop.f32.mrf.mxu0 }
 0x101   : > { %v406_v16 = vadd.f32 %v1142_v37, %v405_v15 }
 0x103   : > { %v427_v19 = vmax.f32 %v406_v16, 0.0 }
 0x108   : > { %v407_v17 = vpop.f32.mrf.mxu0 }
 0x109   : > { %v408_v18 = vadd.f32 %v1142_v37, %v407_v17 }
 0x10b   : > { %v428_v20 = vmax.f32 %v408_v18, 0.0 }
 0x10d   : > { %v437_v21 = vpack.c.bf16 %v428_v20, %v427_v19 }
 0x10f   : > { %545 = vmatmul.bf16.vlgmr.msra.gmra.mxu3 %v437_v21 }
 0x110   : > { %v410_v22 = vpop.f32.mrf.mxu0 }
 0x111   : > { %v411_v25 = vadd.f32 %v1142_v37, %v410_v22 }
 0x113   : > { %v429_v28 = vmax.f32 %v411_v25, 0.0 }
 0x118   : > { %v412_v26 = vpop.f32.mrf.mxu0 }
 0x119   : > { %v413_v27 = vadd.f32 %v1142_v37, %v412_v26 }
 0x11b   : > { %v430_v29 = vmax.f32 %v413_v27, 0.0 }
 0x11d   : > { %v438_v30 = vpack.c.bf16 %v430_v29, %v429_v28 }
 0x11f   : > { %550 = vmatmul.bf16.gmra.mxu3 %v438_v30 }
 0x12c   : > { %v516_v31 = vpop.f32.mrf.mxu1 }
 0x12d   : > { %v517_v33 = vadd.f32 %v917_v32, %v516_v31 }
 0x12f   : > { %v556_v36 = vmax.f32 %v517_v33, 0.0 }
 0x134   : > { %v518_v34 = vpop.f32.mrf.mxu1 }
 0x135   : > { %v519_v35 = vadd.f32 %v917_v32, %v518_v34 }
 0x137   : > { %v557_v38 = vmax.f32 %v519_v35, 0.0 }
 0x139   : > { %v572_v39 = vpack.c.bf16 %v557_v38, %v556_v36 }
 0x13b   : > { %839 = vmatmul.msk.bf16.vlgmr.msra.gmra.mxu2 %vm600_vm1, %v572_v39 }
 0x13c   : > { %v521_v40 = vpop.f32.mrf.mxu1 }
 0x13d   : > { %v522_v37 = vadd.f32 %v917_v32, %v521_v40 }
 0x13f   : > { %v558_v43 = vmax.f32 %v522_v37, 0.0 }
 0x144   : > { %v523_v41 = vpop.f32.mrf.mxu1 }
 0x145   : > { %v524_v42 = vadd.f32 %v917_v32, %v523_v41 }
 0x147   : > { %v559_v44 = vmax.f32 %v524_v42, 0.0 }
 0x149   : > { %v573_v45 = vpack.c.bf16 %v559_v44, %v558_v43 }
 0x14b   : > { %840 = vmatmul.msk.bf16.gmra.mxu2 %vm600_vm1, %v573_v45 }
 0x14c   : > { %v526_v46 = vpop.f32.mrf.mxu1 }
 0x14d   : > { %v527_v47 = vadd.f32 %v917_v32, %v526_v46 }
 0x14f   : > { %v560_v50 = vmax.f32 %v527_v47, 0.0 }
 0x154   : > { %v528_v48 = vpop.f32.mrf.mxu1 }
 0x155   : > { %v529_v49 = vadd.f32 %v917_v32, %v528_v48 }
 0x157   : > { %v561_v51 = vmax.f32 %v529_v49, 0.0 }
 0x159   : > { %v574_v52 = vpack.c.bf16 %v561_v51, %v560_v50 }
 0x15b   : > { %841 = vmatmul.msk.bf16.gmra.mxu2 %vm600_vm1, %v574_v52 }
 0x15c   : > { %v531_v53 = vpop.f32.mrf.mxu1 }
 0x15d   : > { %v532_v54 = vadd.f32 %v917_v32, %v531_v53 }
 0x15f   : > { %v562_v57 = vmax.f32 %v532_v54, 0.0 }
 0x164   : > { %v533_v55 = vpop.f32.mrf.mxu1 }
 0x165   : > { %v534_v56 = vadd.f32 %v917_v32, %v533_v55 }
 0x167   : > { %v563_v58 = vmax.f32 %v534_v56, 0.0 }
 0x169   : > { %v575_v59 = vpack.c.bf16 %v563_v58, %v562_v57 }
 0x16b   : > { %842 = vmatmul.msk.bf16.gmra.mxu2 %vm600_vm1, %v575_v59 }
 0x16c   : > { %v536_v60 = vpop.f32.mrf.mxu1 }
 0x16d   : > { %v537_v61 = vadd.f32 %v917_v32, %v536_v60 }
 0x16f   : > { %v564_v0 = vmax.f32 %v537_v61, 0.0 }
 0x174   : > { %v538_v62 = vpop.f32.mrf.mxu1 }
 0x175   : > { %v539_v63 = vadd.f32 %v917_v32, %v538_v62 }
 0x177   : > { %v565_v1 = vmax.f32 %v539_v63, 0.0 }
 0x179   : > { %v576_v2 = vpack.c.bf16 %v565_v1, %v564_v0 }
 0x17b   : > { %843 = vmatmul.msk.bf16.gmra.mxu2 %vm600_vm1, %v576_v2 }
 0x17c   : > { %v541_v3 = vpop.f32.mrf.mxu1 }
 0x17d   : > { %v542_v4 = vadd.f32 %v917_v32, %v541_v3 }
 0x17f   : > { %v566_v7 = vmax.f32 %v542_v4, 0.0 }
 0x184   : > { %v543_v5 = vpop.f32.mrf.mxu1 }
 0x185   : > { %v544_v6 = vadd.f32 %v917_v32, %v543_v5 }
 0x187   : > { %v567_v8 = vmax.f32 %v544_v6, 0.0 }
 0x189   : > { %v577_v9 = vpack.c.bf16 %v567_v8, %v566_v7 }
 0x18b   : > { %844 = vmatmul.msk.bf16.gmra.mxu2 %vm600_vm1, %v577_v9 }
 0x192   : > { %v546_v10 = vpop.f32.mrf.mxu3 }
 0x193   : > { %v547_v11 = vadd.f32 %v917_v32, %v546_v10 }
 0x195   : > { %v568_v14 = vmax.f32 %v547_v11, 0.0 }
 0x19a   : > { %v548_v12 = vpop.f32.mrf.mxu3 }
 0x19b   : > { %v549_v13 = vadd.f32 %v917_v32, %v548_v12 }
 0x19d   : > { %v569_v15 = vmax.f32 %v549_v13, 0.0 }
 0x19f   : > { %v578_v16 = vpack.c.bf16 %v569_v15, %v568_v14 }
 0x1a1   : > { %845 = vmatmul.msk.bf16.gmra.mxu2 %vm600_vm1, %v578_v16 }
 0x1a2   : > { %v551_v17 = vpop.f32.mrf.mxu3 }
 0x1a3   : > { %v552_v18 = vadd.f32 %v917_v32, %v551_v17 }
 0x1a5   : > { %v570_v21 = vmax.f32 %v552_v18, 0.0 }
 0x1aa   : > { %v553_v19 = vpop.f32.mrf.mxu3 }
 0x1ab   : > { %v554_v20 = vadd.f32 %v917_v32, %v553_v19 }
 0x1ad   : > { %v571_v22 = vmax.f32 %v554_v20, 0.0 }
 0x1af   : > { %v579_v23 = vpack.c.bf16 %v571_v22, %v570_v21 }
 0x1b1   : > { %846 = vmatmul.msk.bf16.gmra.mxu2 %vm600_vm1, %v579_v23 }
 0x1be   : > { %v634_v25 = vpop.f32.mrf.mxu2 }
 0x1bf   : > { %v635_v26 = vadd.f32 %v918_v24, %v634_v25 }
 0x1c1   : > { %674 = vst [vmem:[%s1183_s13] sm:$0xff] %v635_v26 }
 0x1c6   : > { %v636_v27 = vpop.f32.mrf.mxu2 }
 0x1c7   : > { %v637_v28 = vadd.f32 %v918_v24, %v636_v27 }
 0x1c9   : > { %675 = vst [vmem:[%s1183_s13 + $0x8] sm:$0xff] %v637_v28 }
 0x1ce   : > { %v639_v29 = vpop.f32.mrf.mxu2 }
 0x1cf   : > { %v640_v30 = vadd.f32 %v918_v24, %v639_v29 }
 0x1d1   : > { %676 = vst [vmem:[%s1183_s13 + $0x10] sm:$0xff] %v640_v30 }
 0x1d6   : > { %v641_v31 = vpop.f32.mrf.mxu2 }
 0x1d7   : > { %v642_v32 = vadd.f32 %v918_v24, %v641_v31 }
 0x1d9   : > { %677 = vst [vmem:[%s1183_s13 + $0x18] sm:$0xff] %v642_v32 }
 0x1de   : > { %v644_v33 = vpop.f32.mrf.mxu2 }
 0x1df   : > { %v645_v34 = vadd.f32 %v918_v24, %v644_v33 }
 0x1e1   : > { %678 = vst [vmem:[%s1183_s13 + $0x20] sm:$0xff] %v645_v34 }
 0x1e6   : > { %v646_v35 = vpop.f32.mrf.mxu2 }
 0x1e7   : > { %v647_v36 = vadd.f32 %v918_v24, %v646_v35 }
 0x1e9   : > { %679 = vst [vmem:[%s1183_s13 + $0x28] sm:$0xff] %v647_v36 }
 0x1ee   : > { %v649_v38 = vpop.f32.mrf.mxu2 }
 0x1ef   : > { %v650_v39 = vadd.f32 %v918_v24, %v649_v38 }
 0x1f1   : > { %680 = vst [vmem:[%s1183_s13 + $0x30] sm:$0xff] %v650_v39 }
 0x1f6   : > { %v651_v40 = vpop.f32.mrf.mxu2 }
 0x1f7   : > { %v652_v37 = vadd.f32 %v918_v24, %v651_v40 }
 0x1f9   : > { %681 = vst [vmem:[%s1183_s13 + $0x38] sm:$0xff] %v652_v37 }
 0x1fe   : > { %v654_v41 = vpop.f32.mrf.mxu2 }
 0x1ff   : > { %v655_v42 = vadd.f32 %v918_v24, %v654_v41 }
 0x201   : > { %682 = vst [vmem:[%s1183_s13 + $0x40] sm:$0xff] %v655_v42 }
 0x206   : > { %v656_v43 = vpop.f32.mrf.mxu2 }
 0x207   : > { %v657_v44 = vadd.f32 %v918_v24, %v656_v43 }
 0x209   : > { %683 = vst [vmem:[%s1183_s13 + $0x48] sm:$0xff] %v657_v44 }
 0x20e   : > { %v659_v45 = vpop.f32.mrf.mxu2 }
 0x20f   : > { %v660_v46 = vadd.f32 %v918_v24, %v659_v45 }
 0x211   : > { %684 = vst [vmem:[%s1183_s13 + $0x50] sm:$0xff] %v660_v46 }
 0x216   : > { %v661_v47 = vpop.f32.mrf.mxu2 }
 0x217   : > { %v662_v48 = vadd.f32 %v918_v24, %v661_v47 }
 0x219   : > { %685 = vst [vmem:[%s1183_s13 + $0x58] sm:$0xff] %v662_v48 }
 0x224   : > { %v664_v49 = vpop.f32.mrf.mxu2 }
 0x225   : > { %v665_v50 = vadd.f32 %v918_v24, %v664_v49 }
 0x227   : > { %686 = vst [vmem:[%s1183_s13 + $0x60] sm:$0xff] %v665_v50 }
 0x22c   : > { %v666_v51 = vpop.f32.mrf.mxu2 }
 0x22d   : > { %v667_v52 = vadd.f32 %v918_v24, %v666_v51 }
 0x22f   : > { %687 = vst [vmem:[%s1183_s13 + $0x68] sm:$0xff] %v667_v52 }
 0x234   : > { %v669_v53 = vpop.f32.mrf.mxu2 }
 0x235   : > { %v670_v54 = vadd.f32 %v918_v24, %v669_v53 }
 0x237   : > { %688 = vst [vmem:[%s1183_s13 + $0x70] sm:$0xff] %v670_v54 }
 0x23c   : > { %v671_v55 = vpop.f32.mrf.mxu2 }
 0x23d   : > { %v672_v56 = vadd.f32 %v918_v24, %v671_v55 }
 0x23f   : > { %689 = vst [vmem:[%s1183_s13 + $0x78] sm:$0xff] %v672_v56 }
 0x240   : > { %946 = shalt.err (!%p943_p3)
}
 0x241   : > { %s983_s22 = smov 128   ;;  %s984_s13 = smov 8  }
 0x242   : > { %875 = dma.vmem_to_hbm [thread:$0]  (%p1063_p5), %s704_s17, 2048, %s706_s18, %s691_s19, %s983_s22, %s983_s22, %s984_s13  }
 0x243 PF: > { %p881_p4 = scmp.ge.s32.totalorder %s981_s27, 2  ;;  %s720_s15 = sand.u32 1, %s969_s24  }
 0x244   : > { %s721_s16 = scalar_lea.sflag [#allocation3], %s720_s15 }
 0x245   : > { %p878_p7 = pnand %p881_p4, %p1067_p6 }
 0x247   : > { %p879_p8 = pneg %p878_p7 }
 0x249   : > { %964 = dma.done.wait (%p879_p8), %s721_s16, 2048  }
 0x24a   : > { %966 = vsyncadd (%p879_p8), %s721_s16, 4294965248  ;;  %p17_p9 = scmp.ge.s32.totalorder %s1050_s30, 4   ;;  %s1245_s24 = smov %s973_s25 }
 0x24b   : > { %s1246_s25 = smov %s977_s26  ;;  %s1247_s26 = smov %s1061_s10 }
 0x24c   : > { %s1248_s27 = smov %s1050_s30  ;;  %19 = sbr.rel (!%p17_p9) target bundleno = 3 (0x3), region = 83 }
 0x251   :  { %727 = vsyncpa [#allocation3], 1 }
 0x252   :  { %729 = vsyncpa [#allocation3 + $0x1], 1 }

</bundles_post_ra>
